<compile_context>
chip_gen: v7x
topology: tpu7x:2x2x1
jax: 0.10.0
libtpu: 0.0.40
codegen_flags: <defaults>
</compile_context>

<pallas_src>
import jax
import jax.numpy as jnp
from jax.experimental import pallas as pl
from jax.experimental.pallas import tpu as pltpu


def qnetwork_kernel(x_ref, w1_ref, b1_ref, w2_ref, b2_ref, w3_ref, b3_ref, o_ref):
    """Fused forward for one batch tile: relu(x@W1+b1) -> relu(.@W2+b2) -> .@W3+b3."""
    x = x_ref[...].astype(jnp.bfloat16)  # cast in-kernel (no wrapper pass over x)

    h1 = jnp.dot(x, w1_ref[...], preferred_element_type=jnp.float32) + b1_ref[...]
    h1 = jnp.maximum(h1, 0.0).astype(jnp.bfloat16)

    h2 = jnp.dot(h1, w2_ref[...], preferred_element_type=jnp.float32) + b2_ref[...]
    h2 = jnp.maximum(h2, 0.0).astype(jnp.bfloat16)

    out = jnp.dot(h2, w3_ref[...], preferred_element_type=jnp.float32) + b3_ref[...]
    o_ref[...] = out.astype(o_ref.dtype)


def prepare_params(params):
    """One-time cast (at init / param-update time): bf16 weights, f32 biases."""
    return {
        "w1": params["w1"].astype(jnp.bfloat16),
        "w2": params["w2"].astype(jnp.bfloat16),
        "w3": params["w3"].astype(jnp.bfloat16),
        "b1": params["b1"].astype(jnp.float32),
        "b2": params["b2"].astype(jnp.float32),
        "b3": params["b3"].astype(jnp.float32),
    }


def qnetwork_forward(x, kparams, *, block_b=1024):
    """x: [B, state_size] float32; kparams: prepare_params() output.

    Returns [B, action_size] float32 Q-values."""
    w1, b1 = kparams["w1"], kparams["b1"]
    w2, b2 = kparams["w2"], kparams["b2"]
    w3, b3 = kparams["w3"], kparams["b3"]

    B, S = x.shape
    F1 = w1.shape[1]
    F2 = w2.shape[1]
    A = w3.shape[1]

    # Batch tiling: large tiles to amortize per-step overhead.  If the whole
    # batch fits in one tile, use the full dim (exempt from the /8 rule);
    # otherwise block_b must be a multiple of 8 (default 1024 is).
    if B <= block_b:
        TB = B
    else:
        TB = block_b
    nb = pl.cdiv(B, TB)  # ragged last tile handled by Pallas (rows clipped)

    def resident(a):  # whole array, same block every grid step -> stays in VMEM
        return pl.BlockSpec(a.shape, lambda i: (0,) * a.ndim)

    flops = 2 * B * (S * F1 + F1 * F2 + F2 * A)
    bytes_accessed = (
        x.size * 4
        + (w1.size + w2.size + w3.size) * 2
        + (b1.size + b2.size + b3.size) * 4
        + B * A * 4
    )

    out = pl.pallas_call(
        qnetwork_kernel,
        out_shape=jax.ShapeDtypeStruct((B, A), jnp.float32),
        grid=(nb,),
        in_specs=[
            pl.BlockSpec((TB, S), lambda i: (i, 0)),  # streamed activations (f32)
            resident(w1), resident(b1),
            resident(w2), resident(b2),
            resident(w3), resident(b3),
        ],
        # Last block dim == full array dim (A), so no 128-lane pad is needed.
        out_specs=pl.BlockSpec((TB, A), lambda i: (i, 0)),
        compiler_params=pltpu.CompilerParams(
            dimension_semantics=("parallel",),  # shard batch tiles across v7x's 2 TCs
        ),
        cost_estimate=pl.CostEstimate(
            flops=flops, transcendentals=0, bytes_accessed=bytes_accessed
        ),
    )(x, w1, b1, w2, b2, w3, b3)

    return out


def init_qnetwork_params(key, state_size, action_size, fc1_units=64, fc2_units=64):
    """Deterministic init mimicking nn.Linear's U(-1/sqrt(fan_in), 1/sqrt(fan_in)).

    Weights are stored as [in_features, out_features] (transposed vs PyTorch)."""
    def linear(k, fan_in, fan_out):
        kw, kb = jax.random.split(k)
        bound = 1.0 / jnp.sqrt(jnp.float32(fan_in))
        w = jax.random.uniform(kw, (fan_in, fan_out), jnp.float32, -bound, bound)
        b = jax.random.uniform(kb, (1, fan_out), jnp.float32, -bound, bound)
        return w, b

    k1, k2, k3 = jax.random.split(key, 3)
    w1, b1 = linear(k1, state_size, fc1_units)
    w2, b2 = linear(k2, fc1_units, fc2_units)
    w3, b3 = linear(k3, fc2_units, action_size)
    return {"w1": w1, "b1": b1, "w2": w2, "b2": b2, "w3": w3, "b3": b3}


def qnetwork_reference(x, p):
    """Pure-JAX reference replicating the kernel's bf16-input / f32-accumulate math."""
    cast = lambda a: a.astype(jnp.bfloat16).astype(jnp.float32)
    h1 = jnp.maximum(cast(x) @ cast(p["w1"]) + p["b1"], 0.0)
    h2 = jnp.maximum(cast(h1) @ cast(p["w2"]) + p["b2"], 0.0)
    return cast(h2) @ cast(p["w3"]) + p["b3"]


if __name__ == "__main__":
    key = jax.random.PRNGKey(0)
    k_params, k_x = jax.random.split(key)

    batch = 8
    state_size = 8
    action_size = 4
    fc1_units = 64
    fc2_units = 64

    params = init_qnetwork_params(k_params, state_size, action_size,
                                  fc1_units, fc2_units)
    kparams = prepare_params(params)  # one-time cast, hoisted out of the forward
    x = jax.random.normal(k_x, (batch, state_size), dtype=jnp.float32)

    out = qnetwork_forward(x, kparams)
    out = jax.block_until_ready(out)

    ref = qnetwork_reference(x, params)
    assert out.shape == (batch, action_size)
    assert jnp.allclose(out, ref, atol=2e-2, rtol=2e-2), "mismatch vs reference"

    # Also exercise a ragged multi-tile batch (partial last tile path).
    big_b = 2500
    xb = jax.random.normal(jax.random.PRNGKey(1), (big_b, state_size), jnp.float32)
    out_big = jax.block_until_ready(qnetwork_forward(xb, kparams))
    ref_big = qnetwork_reference(xb, params)
    assert out_big.shape == (big_b, action_size)
    assert jnp.allclose(out_big, ref_big, atol=2e-2, rtol=2e-2), "mismatch (big batch)"

    print("KERNEL_OK")
</pallas_src>

<mosaic_0001>
module attributes {stable_mosaic.version = 11 : i64} {
  func.func @qnetwork_kernel(%arg0: i32, %arg1: memref<8x8xf32, #tpu.memory_space<vmem>>, %arg2: memref<8x64xbf16, #tpu.memory_space<vmem>>, %arg3: memref<1x64xf32, #tpu.memory_space<vmem>>, %arg4: memref<64x64xbf16, #tpu.memory_space<vmem>>, %arg5: memref<1x64xf32, #tpu.memory_space<vmem>>, %arg6: memref<64x4xbf16, #tpu.memory_space<vmem>>, %arg7: memref<1x4xf32, #tpu.memory_space<vmem>>, %arg8: memref<8x4xf32, #tpu.memory_space<vmem>>) attributes {dimension_semantics = [#tpu.dimension_semantics<parallel>], iteration_bounds = array<i64: 1>, scalar_prefetch = 0 : i64, scratch_operands = 0 : i64, tpu.core_type = #tpu.core_type<tc>, window_params = [{transform_indices = @transform_0, window_bounds = array<i64: 8, 8>}, {pipeline_mode = #tpu.pipeline_mode<synchronous>, transform_indices = @transform_1, window_bounds = array<i64: 8, 64>}, {pipeline_mode = #tpu.pipeline_mode<synchronous>, transform_indices = @transform_2, window_bounds = array<i64: 1, 64>}, {pipeline_mode = #tpu.pipeline_mode<synchronous>, transform_indices = @transform_3, window_bounds = array<i64: 64, 64>}, {pipeline_mode = #tpu.pipeline_mode<synchronous>, transform_indices = @transform_4, window_bounds = array<i64: 1, 64>}, {pipeline_mode = #tpu.pipeline_mode<synchronous>, transform_indices = @transform_5, window_bounds = array<i64: 64, 4>}, {pipeline_mode = #tpu.pipeline_mode<synchronous>, transform_indices = @transform_6, window_bounds = array<i64: 1, 4>}, {transform_indices = @transform_7, window_bounds = array<i64: 8, 4>}]} {
    %c0 = arith.constant 0 : index
    %c0_0 = arith.constant 0 : index
    %0 = vector.load %arg1[%c0, %c0_0] : memref<8x8xf32, #tpu.memory_space<vmem>>, vector<8x8xf32>
    %1 = arith.truncf %0 : vector<8x8xf32> to vector<8x8xbf16>
    %c0_1 = arith.constant 0 : index
    %c0_2 = arith.constant 0 : index
    %2 = vector.load %arg2[%c0_1, %c0_2] : memref<8x64xbf16, #tpu.memory_space<vmem>>, vector<8x64xbf16>
    %cst = arith.constant dense<0.000000e+00> : vector<8x64xf32>
    %3 = tpu.matmul %1, %2, %cst {dimension_numbers = #tpu.dot_dimension_numbers<[1], [0], [0], [1], [0, 0, 1, 1], [], []>} : vector<8x8xbf16>, vector<8x64xbf16>, vector<8x64xf32> -> vector<8x64xf32>
    %c0_3 = arith.constant 0 : index
    %c0_4 = arith.constant 0 : index
    %4 = vector.load %arg3[%c0_3, %c0_4] : memref<1x64xf32, #tpu.memory_space<vmem>>, vector<1x64xf32>
    %5 = vector.broadcast %4 : vector<1x64xf32> to vector<8x64xf32>
    %6 = arith.addf %3, %5 : vector<8x64xf32>
    %cst_5 = arith.constant 0.000000e+00 : f32
    %7 = vector.broadcast %cst_5 : f32 to vector<8x64xf32>
    %8 = arith.maximumf %6, %7 : vector<8x64xf32>
    %9 = arith.truncf %8 : vector<8x64xf32> to vector<8x64xbf16>
    %c0_6 = arith.constant 0 : index
    %c0_7 = arith.constant 0 : index
    %10 = vector.load %arg4[%c0_6, %c0_7] : memref<64x64xbf16, #tpu.memory_space<vmem>>, vector<64x64xbf16>
    %cst_8 = arith.constant dense<0.000000e+00> : vector<8x64xf32>
    %11 = tpu.matmul %9, %10, %cst_8 {dimension_numbers = #tpu.dot_dimension_numbers<[1], [0], [0], [1], [0, 0, 1, 1], [], []>} : vector<8x64xbf16>, vector<64x64xbf16>, vector<8x64xf32> -> vector<8x64xf32>
    %c0_9 = arith.constant 0 : index
    %c0_10 = arith.constant 0 : index
    %12 = vector.load %arg5[%c0_9, %c0_10] : memref<1x64xf32, #tpu.memory_space<vmem>>, vector<1x64xf32>
    %13 = vector.broadcast %12 : vector<1x64xf32> to vector<8x64xf32>
    %14 = arith.addf %11, %13 : vector<8x64xf32>
    %cst_11 = arith.constant 0.000000e+00 : f32
    %15 = vector.broadcast %cst_11 : f32 to vector<8x64xf32>
    %16 = arith.maximumf %14, %15 : vector<8x64xf32>
    %17 = arith.truncf %16 : vector<8x64xf32> to vector<8x64xbf16>
    %c0_12 = arith.constant 0 : index
    %c0_13 = arith.constant 0 : index
    %18 = vector.load %arg6[%c0_12, %c0_13] : memref<64x4xbf16, #tpu.memory_space<vmem>>, vector<64x4xbf16>
    %cst_14 = arith.constant dense<0.000000e+00> : vector<8x4xf32>
    %19 = tpu.matmul %17, %18, %cst_14 {dimension_numbers = #tpu.dot_dimension_numbers<[1], [0], [0], [1], [0, 0, 1, 1], [], []>} : vector<8x64xbf16>, vector<64x4xbf16>, vector<8x4xf32> -> vector<8x4xf32>
    %c0_15 = arith.constant 0 : index
    %c0_16 = arith.constant 0 : index
    %20 = vector.load %arg7[%c0_15, %c0_16] : memref<1x4xf32, #tpu.memory_space<vmem>>, vector<1x4xf32>
    %21 = vector.broadcast %20 : vector<1x4xf32> to vector<8x4xf32>
    %22 = arith.addf %19, %21 : vector<8x4xf32>
    %c0_17 = arith.constant 0 : index
    %c0_18 = arith.constant 0 : index
    %23 = vector.load %arg8[%c0_17, %c0_18] : memref<8x4xf32, #tpu.memory_space<vmem>>, vector<8x4xf32>
    tpu.vector_store %arg8[%c0_17, %c0_18], %22 {strides = array<i32>} : memref<8x4xf32, #tpu.memory_space<vmem>>, vector<8x4xf32>,
    return
  }
  func.func @transform_0(%arg0: i32) -> (i32, i32) {
    %c0_i32 = arith.constant 0 : i32
    %c0_i32_0 = arith.constant 0 : i32
    return %arg0, %c0_i32 : i32, i32
  }
  func.func @transform_1(%arg0: i32) -> (i32, i32) {
    %c0_i32 = arith.constant 0 : i32
    %c0_i32_0 = arith.constant 0 : i32
    %c0_i32_1 = arith.constant 0 : i32
    return %c0_i32, %c0_i32_0 : i32, i32
  }
  func.func @transform_2(%arg0: i32) -> (i32, i32) {
    %c0_i32 = arith.constant 0 : i32
    %c0_i32_0 = arith.constant 0 : i32
    %c0_i32_1 = arith.constant 0 : i32
    return %c0_i32, %c0_i32_0 : i32, i32
  }
  func.func @transform_3(%arg0: i32) -> (i32, i32) {
    %c0_i32 = arith.constant 0 : i32
    %c0_i32_0 = arith.constant 0 : i32
    %c0_i32_1 = arith.constant 0 : i32
    return %c0_i32, %c0_i32_0 : i32, i32
  }
  func.func @transform_4(%arg0: i32) -> (i32, i32) {
    %c0_i32 = arith.constant 0 : i32
    %c0_i32_0 = arith.constant 0 : i32
    %c0_i32_1 = arith.constant 0 : i32
    return %c0_i32, %c0_i32_0 : i32, i32
  }
  func.func @transform_5(%arg0: i32) -> (i32, i32) {
    %c0_i32 = arith.constant 0 : i32
    %c0_i32_0 = arith.constant 0 : i32
    %c0_i32_1 = arith.constant 0 : i32
    return %c0_i32, %c0_i32_0 : i32, i32
  }
  func.func @transform_6(%arg0: i32) -> (i32, i32) {
    %c0_i32 = arith.constant 0 : i32
    %c0_i32_0 = arith.constant 0 : i32
    %c0_i32_1 = arith.constant 0 : i32
    return %c0_i32, %c0_i32_0 : i32, i32
  }
  func.func @transform_7(%arg0: i32) -> (i32, i32) {
    %c0_i32 = arith.constant 0 : i32
    %c0_i32_0 = arith.constant 0 : i32
    return %arg0, %c0_i32 : i32, i32
  }
}

</mosaic_0001>

<bundles_post_ra>
// kernel: tpu_custom_call.1
= control target key start
LH: loop header
LB: loop body
LE: loop exit
PB: predicated region body
PF: predicated region fallthrough
CT: control target
= control target key end

     0   :  { %vm41_vm0 = vcmask 1043456   ;;  %v326_v0 = vmov 0.0   ;;  %vm327_vm1 = vmmov 0   ;;  %vm37_vm2 = vcmask 64512   ;;  %s412_s1 = inlined_call_operand.vmem [shape: bf16[8,64], index: 1, kind: input, shape index: {}]   ;;  %s413_s0 = inlined_call_operand.vmem [shape: f32[8,8], index: 0, kind: input, shape index: {}]   ;;  %s414_s3 = inlined_call_operand.vmem [shape: bf16[64,64], index: 3, kind: input, shape index: {}]   ;;  %s415_s5 = inlined_call_operand.vmem [shape: bf16[64,4], index: 5, kind: input, shape index: {}]   ;;  %s416_s2 = inlined_call_operand.vmem [shape: f32[1,64], index: 2, kind: input, shape index: {}]   ;;  %s417_s4 = inlined_call_operand.vmem [shape: f32[1,64], index: 4, kind: input, shape index: {}]   ;;  %s418_s6 = inlined_call_operand.vmem [shape: f32[1,4], index: 6, kind: input, shape index: {}]   ;;  %s419_s7 = inlined_call_operand.vmem [shape: f32[8,4], index: 7, kind: output, shape index: {}]  }
   0x1   :  { %286 = vmatprep.subr.bf16.mxu0 %v326_v0  ;;  %v29_v1 = vld [vmem:[%s412_s1] sm:$0xf]  ;;  %288 = vmatprep.mubr.msk.bf16.mxu0 %vm327_vm1, %v326_v0  ;;  %v319_v6 = vld [vmem:[%s414_s3 + $0x8] sm:$0xff]   ;;  %v320_v7 = vld [vmem:[%s414_s3 + $0x10] sm:$0xff]   ;;  %vm126_vm3 = vcmask 523264   ;;  %vm254_vm4 = vcmask 31744  }
   0x2   :  { %v27_v2 = vld [vmem:[%s413_s0] sm:$0xff]  ;;  %v43_v3 = vsel %vm41_vm0, %v29_v1, 0  ;;  %292 = vmatprep.subr.bf16.mxu1 %v326_v0  ;;  %300 = vmatprep.mubr.msk.bf16.mxu1 %vm327_vm1, %v326_v0  ;;  %v321_v8 = vld [vmem:[%s414_s3 + $0x18] sm:$0xff]   ;;  %v323_v10 = vld [vmem:[%s415_s5 + $0x8] sm:$0xff]  }
   0x3   :  { %v28_v4 = vpack.c.bf16 %v27_v2, %v27_v2  ;;  %v318_v5 = vld [vmem:[%s414_s3] sm:$0xff]   ;;  %287 = vmatpush3.bf16.msra.mxu0 %v43_v3  ;;  %v324_v19 = vld [vmem:[%s415_s5 + $0x10] sm:$0xff]   ;;  %v325_v20 = vld [vmem:[%s415_s5 + $0x18] sm:$0xff]  }
   0x4   :  { %293 = vmatpush3.bf16.msra.mxu1 %v318_v5  ;;  %304 = vmatprep.subr.bf16.mxu0 %v326_v0  ;;  %v322_v9 = vld [vmem:[%s415_s5] sm:$0xff]  }
   0x5   :  { %294 = vmatprep.subr.bf16.mxu1 %v326_v0  ;;  %v260_v11 = vld [vmem:[%s416_s2] ss:$0 sm:$0xff] }
   0x6   :  { %289 = vmatmul.mubr.msk.bf16.vlgmr.msra.gmra.mrb[0].mxu0 %vm37_vm2, %v28_v4  ;;  %v262_v21 = vld [vmem:[%s417_s4] ss:$0 sm:$0xff] }
   0x7   :  { %312 = vmatprep.mubr.msk.bf16.mxu0 %vm327_vm1, %v326_v0  ;;  %305 = vmatpush3.bf16.msra.mxu0 %v322_v9  ;;  %v268_v29 = vld [vmem:[%s418_s6] ss:$0 sm:$0xff] }
   0x8   :  { %295 = vmatpush3.bf16.msra.mxu1 %v319_v6  ;;  %306 = vmatprep.subr.bf16.mxu0 %v326_v0 }
   0x9   :  { %296 = vmatprep.subr.bf16.mxu1 %v326_v0 }
   0xb   :  { %307 = vmatpush3.bf16.msra.mxu0 %v323_v10 }
   0xc   :  { %297 = vmatpush3.bf16.msra.mxu1 %v320_v7  ;;  %308 = vmatprep.subr.bf16.mxu0 %v326_v0 }
   0xd   :  { %298 = vmatprep.subr.bf16.mxu1 %v326_v0 }
   0xf   :  { %309 = vmatpush3.bf16.msra.mxu0 %v324_v19 }
  0x10   :  { %299 = vmatpush3.bf16.msra.mxu1 %v321_v8  ;;  %310 = vmatprep.subr.bf16.mxu0 %v326_v0 }
  0x13   :  { %311 = vmatpush3.bf16.msra.mxu0 %v325_v20 }
  0xd9   :  { %v79_v12 = vpop.f32.mrb[0].mxu0 }
  0xda   :  { %v80_v13 = vadd.f32 %v260_v11, %v79_v12  ;;  %v290_v14 = vpop.f32.mrb[1].mxu0 }
  0xdb   :  { %v82_v15 = vpop.f32.mrb[2].mxu0 }
  0xdc   :  { %v85_v16 = vmax.f32 %v80_v13, 0.0  ;;  %v291_v17 = vpop.f32.mrb[3].mxu0 }
  0xde   :  { %v86_v18 = vpack.c.bf16 %v85_v16, %v85_v16 }
  0xe0   :  { %301 = vmatmul.mubr.msk.bf16.vlgmr.msra.gmra.mrb[0].mxu1 %vm126_vm3, %v86_v18 }
 0x1b3   :  { %v164_v22 = vpop.f32.mrb[0].mxu1 }
 0x1b4   :  { %v165_v23 = vadd.f32 %v262_v21, %v164_v22  ;;  %v302_v24 = vpop.f32.mrb[1].mxu1 }
 0x1b5   :  { %v167_v25 = vpop.f32.mrb[2].mxu1 }
 0x1b6   :  { %v170_v26 = vmax.f32 %v165_v23, 0.0  ;;  %v303_v27 = vpop.f32.mrb[3].mxu1 }
 0x1b8   :  { %v171_v28 = vpack.c.bf16 %v170_v26, %v170_v26 }
 0x1ba   :  { %313 = vmatmul.mubr.msk.bf16.vlgmr.msra.gmra.mrb[4].mxu0 %vm126_vm3, %v171_v28 }
 0x28d   :  { %v248_v30 = vpop.f32.mrb[4].mxu0 }
 0x28e   :  { %v249_v31 = vadd.f32 %v268_v29, %v248_v30  ;;  %v314_v32 = vpop.f32.mrb[5].mxu0 }
 0x28f   :  { %v251_v33 = vpop.f32.mrb[6].mxu0 }
 0x290   :  { %255 = vst.msk [vmem:[%s419_s7] sm:$0xff] %vm254_vm4, %v249_v31  ;;  %v315_v34 = vpop.f32.mrb[7].mxu0 }

</bundles_post_ra>
